<compile_context>
chip_gen: v5e
topology: v5e:2x2
jax: 0.10.0
libtpu: 0.0.40
codegen_flags: <defaults>
</compile_context>

<pallas_src>
import functools

import jax
import jax.numpy as jnp
from jax.experimental import pallas as pl
from jax.experimental.pallas import tpu as pltpu


def _lm_criterion_kernel(inp_ref, tgt_ref, msk_ref, num_ref, acc_ref, *,
                         seq_len, seq_tile, vocab_tile, tiles_per_part):
    p = pl.program_id(0)          # megacore partition axis ("parallel")
    t = pl.program_id(1)          # seq-tile axis within partition ("arbitrary")
    v = pl.program_id(2)          # vocab-tile axis ("arbitrary", innermost)

    @pl.when(jnp.logical_and(t == 0, v == 0))
    def _():
        acc_ref[...] = jnp.zeros_like(acc_ref)

    logp = inp_ref[...]                       # (B, tT, tV) f32
    tgt = tgt_ref[...]                        # (B, tT, 1)  i32
    msk = msk_ref[...][:, :, 0]               # (B, tT)     f32

    B, tT, tV = logp.shape

    # Gather along vocab: compare absolute vocab id vs. target, select, lane reduce.
    vocab_ids = (jax.lax.broadcasted_iota(jnp.int32, (B, tT, tV), 2)
                 + v * vocab_tile)
    gathered = jnp.sum(jnp.where(vocab_ids == tgt, logp, 0.0), axis=-1)   # (B, tT)

    # Validity predicate: padded tail rows of the last real tile and clamped duplicate
    # tiles (built from the *unclamped* logical seq-tile index) contribute zero.
    g = p * tiles_per_part + t
    seq_pos = jax.lax.broadcasted_iota(jnp.int32, (B, tT), 1) + g * seq_tile
    valid = seq_pos < seq_len

    acc_ref[...] += jnp.where(valid, -gathered * msk, 0.0)   # cheap VPU add each step

    # Single cross-lane reduce + scalar store per partition (deferred to last tile).
    @pl.when(jnp.logical_and(t == pl.num_programs(1) - 1,
                             v == pl.num_programs(2) - 1))
    def _():
        num_ref[0, 0] = jnp.sum(acc_ref[...])


def _pick_tiles(B, T, V, itemsize):
    """Pick (seq_tile, vocab_tile) so one input block fits the per-buffer VMEM budget."""
    budget = 8 * 1024 * 1024          # safe double-buffered default
    try:
        cap = pltpu.get_tpu_info().vmem_capacity_bytes
        budget = int(min(max(cap // 8, 2 * 1024 * 1024), 16 * 1024 * 1024))
    except Exception:
        pass

    if B * T * V * itemsize <= budget:
        return T, V                   # single full block (block dims == array dims)

    # Prefer full-vocab blocks, tiling only the sequence (multiples of 8 sublanes).
    row_bytes = max(B * V * itemsize, 1)
    tT = (budget // row_bytes) // 8 * 8
    if tT >= 8:
        return tT, V

    # Vocab too wide even for 8 rows: tile the vocab too (multiples of 128 lanes).
    tT = T if T < 8 else 8
    col_bytes = max(B * tT * itemsize, 1)
    tV = max(128, (budget // col_bytes) // 128 * 128)
    if tV >= V:
        tV = V
    return tT, tV


def language_model_criterion(inp, target, mask):
    """Pallas TPU implementation of LanguageModelCriterion.forward."""
    B, T, V = inp.shape
    # Keep f32 for exact parity with the PyTorch module.
    inp = inp.astype(jnp.float32)
    target3 = target[:, :T].astype(jnp.int32).reshape(B, T, 1)
    mask2 = mask[:, :T].astype(jnp.float32)
    mask3 = mask2.reshape(B, T, 1)

    tT, tV = _pick_tiles(B, T, V, 4)
    num_seq_tiles = pl.cdiv(T, tT)
    num_voc_tiles = pl.cdiv(V, tV)
    # Shard sequence halves across v7x's 2 TensorCores (no-op on single-core v5e/v6e).
    num_parts = 2 if num_seq_tiles >= 2 else 1
    tiles_per_part = pl.cdiv(num_seq_tiles, num_parts)
    last_tile = num_seq_tiles - 1

    def inp_index_map(p, t, v):
        # Clamp so padded logical tiles never DMA out of bounds; the kernel's validity
        # predicate (built from the unclamped index) zeroes their contribution.
        g = jnp.minimum(p * tiles_per_part + t, last_tile)
        return (0, g, v)

    def side_index_map(p, t, v):
        g = jnp.minimum(p * tiles_per_part + t, last_tile)
        return (0, g, 0)          # constant across v -> no re-DMA on the inner axis

    kernel = functools.partial(
        _lm_criterion_kernel,
        seq_len=T, seq_tile=tT, vocab_tile=tV, tiles_per_part=tiles_per_part)

    inp_tile_bytes = B * tT * tV * 4
    side_tile_bytes = B * tT * (4 + 4)
    vmem_limit_bytes = int(min(
        48 * 1024 * 1024,
        max(16 * 1024 * 1024,
            2 * (inp_tile_bytes + side_tile_bytes) + B * tT * 4 + (4 << 20))))

    partials = pl.pallas_call(
        kernel,
        out_shape=jax.ShapeDtypeStruct((num_parts, 1), jnp.float32),
        grid_spec=pltpu.PrefetchScalarGridSpec(
            num_scalar_prefetch=0,
            grid=(num_parts, tiles_per_part, num_voc_tiles),
            in_specs=[
                pl.BlockSpec((B, tT, tV), inp_index_map),
                pl.BlockSpec((B, tT, 1), side_index_map),
                pl.BlockSpec((B, tT, 1), side_index_map),
            ],
            out_specs=pl.BlockSpec((1, 1), lambda p, t, v: (p, 0),
                                   memory_space=pltpu.MemorySpace.SMEM),
            scratch_shapes=[pltpu.VMEM((B, tT), jnp.float32)],
        ),
        compiler_params=pltpu.CompilerParams(
            dimension_semantics=("parallel", "arbitrary", "arbitrary"),
            vmem_limit_bytes=vmem_limit_bytes,
        ),
    )(inp, target3, mask3)

    num = jnp.sum(partials)
    den = jnp.sum(mask2)          # denominator computed in XLA glue (mask is tiny)
    return num / den


def _reference(inp, target, mask):
    T = inp.shape[1]
    target = target[:, :T]
    mask = mask[:, :T].astype(jnp.float32)
    gathered = jnp.take_along_axis(
        inp, target[:, :, None].astype(jnp.int32), axis=2)[:, :, 0]
    out = -gathered * mask
    return jnp.sum(out) / jnp.sum(mask)


if __name__ == "__main__":
    key = jax.random.PRNGKey(0)
    B, T, V = 2, 8, 32
    T_full = T + 2  # target/mask longer than input seq length, exercises slicing

    k1, k2, k3 = jax.random.split(key, 3)
    logits = jax.random.normal(k1, (B, T, V), dtype=jnp.float32)
    logprobs = jax.nn.log_softmax(logits, axis=-1)
    target = jax.random.randint(k2, (B, T_full), 0, V, dtype=jnp.int32)
    mask = (jax.random.uniform(k3, (B, T_full)) > 0.3).astype(jnp.float32)
    # Ensure mask is not all zero to avoid division by zero.
    mask = mask.at[0, 0].set(1.0)

    loss = jax.block_until_ready(language_model_criterion(logprobs, target, mask))
    ref = jax.block_until_ready(_reference(logprobs, target, mask))

    assert jnp.allclose(loss, ref, atol=1e-5, rtol=1e-5), (loss, ref)
    print("KERNEL_OK")
</pallas_src>

<mosaic_0001>
module attributes {stable_mosaic.version = 11 : i64} {
  func.func @_lm_criterion_kernel(%arg0: i32, %arg1: i32, %arg2: i32, %arg3: memref<2x8x32xf32, #tpu.memory_space<vmem>>, %arg4: memref<2x8x1xi32, #tpu.memory_space<vmem>>, %arg5: memref<2x8x1xf32, #tpu.memory_space<vmem>>, %arg6: memref<1x1xf32, #tpu.memory_space<smem>>, %arg7: memref<2x8xf32, #tpu.memory_space<vmem>>) attributes {dimension_semantics = [#tpu.dimension_semantics<parallel>, #tpu.dimension_semantics<arbitrary>, #tpu.dimension_semantics<arbitrary>], iteration_bounds = array<i64: 1, 1, 1>, scalar_prefetch = 0 : i64, scratch_operands = 1 : i64, tpu.core_type = #tpu.core_type<tc>, window_params = [{transform_indices = @transform_0, window_bounds = array<i64: 2, 8, 32>}, {transform_indices = @transform_1, window_bounds = array<i64: 2, 8, 1>}, {transform_indices = @transform_2, window_bounds = array<i64: 2, 8, 1>}, {transform_indices = @transform_3, window_bounds = array<i64: 1, 1>}]} {
    %c0_i32 = arith.constant 0 : i32
    %0 = arith.cmpi eq, %arg1, %c0_i32 : i32
    %c0_i32_0 = arith.constant 0 : i32
    %1 = arith.cmpi eq, %arg2, %c0_i32_0 : i32
    %2 = arith.andi %0, %1 : i1
    %3 = arith.extui %2 : i1 to i32
    %c0_i32_1 = arith.constant 0 : i32
    %4 = arith.cmpi ne, %3, %c0_i32_1 : i32
    scf.if %4 {
      %cst_21 = arith.constant 0.000000e+00 : f32
      %39 = vector.broadcast %cst_21 : f32 to vector<2x8xf32>
      %c0_22 = arith.constant 0 : index
      %c0_23 = arith.constant 0 : index
      %40 = vector.load %arg7[%c0_22, %c0_23] : memref<2x8xf32, #tpu.memory_space<vmem>>, vector<2x8xf32>
      tpu.vector_store %arg7[%c0_22, %c0_23], %39 {strides = array<i32>} : memref<2x8xf32, #tpu.memory_space<vmem>>, vector<2x8xf32>,
    } else {
    }
    %c0 = arith.constant 0 : index
    %c0_2 = arith.constant 0 : index
    %c0_3 = arith.constant 0 : index
    %5 = vector.load %arg3[%c0, %c0_2, %c0_3] : memref<2x8x32xf32, #tpu.memory_space<vmem>>, vector<2x8x32xf32>
    %c0_4 = arith.constant 0 : index
    %c0_5 = arith.constant 0 : index
    %c0_6 = arith.constant 0 : index
    %6 = vector.load %arg4[%c0_4, %c0_5, %c0_6] : memref<2x8x1xi32, #tpu.memory_space<vmem>>, vector<2x8x1xi32>
    %c0_7 = arith.constant 0 : index
    %c0_8 = arith.constant 0 : index
    %c0_9 = arith.constant 0 : index
    %7 = vector.load %arg5[%c0_7, %c0_8, %c0_9] : memref<2x8x1xf32, #tpu.memory_space<vmem>>, vector<2x8x1xf32>
    %8 = vector.shape_cast %7 : vector<2x8x1xf32> to vector<2x8xf32>
    %9 = tpu.iota {dimensions = array<i32: 2>} : vector<2x8x32xi32>
    %c32_i32 = arith.constant 32 : i32
    %10 = arith.muli %arg2, %c32_i32 : i32
    %11 = vector.broadcast %10 : i32 to vector<2x8x32xi32>
    %12 = arith.addi %9, %11 : vector<2x8x32xi32>
    %13 = vector.broadcast %6 : vector<2x8x1xi32> to vector<2x8x32xi32>
    %14 = arith.cmpi eq, %12, %13 : vector<2x8x32xi32>
    %cst = arith.constant 0.000000e+00 : f32
    %15 = vector.broadcast %cst : f32 to vector<2x8x32xf32>
    %16 = arith.select %14, %5, %15 : vector<2x8x32xi1>, vector<2x8x32xf32>
    %cst_10 = arith.constant dense<0.000000e+00> : vector<2x8xf32>
    %17 = vector.multi_reduction <add>, %16, %cst_10 [2] : vector<2x8x32xf32> to vector<2x8xf32>
    %c1_i32 = arith.constant 1 : i32
    %18 = arith.muli %arg0, %c1_i32 : i32
    %19 = arith.addi %18, %arg1 : i32
    %20 = tpu.iota {dimensions = array<i32: 1>} : vector<2x8xi32>
    %c8_i32 = arith.constant 8 : i32
    %21 = arith.muli %19, %c8_i32 : i32
    %22 = vector.broadcast %21 : i32 to vector<2x8xi32>
    %23 = arith.addi %20, %22 : vector<2x8xi32>
    %c8_i32_11 = arith.constant 8 : i32
    %24 = vector.broadcast %c8_i32_11 : i32 to vector<2x8xi32>
    %25 = arith.cmpi slt, %23, %24 : vector<2x8xi32>
    %c0_12 = arith.constant 0 : index
    %c0_13 = arith.constant 0 : index
    %26 = vector.load %arg7[%c0_12, %c0_13] : memref<2x8xf32, #tpu.memory_space<vmem>>, vector<2x8xf32>
    %cst_14 = arith.constant 0.000000e+00 : f32
    %27 = vector.broadcast %cst_14 : f32 to vector<2x8xf32>
    %28 = arith.subf %27, %17 : vector<2x8xf32>
    %29 = arith.mulf %28, %8 : vector<2x8xf32>
    %cst_15 = arith.constant 0.000000e+00 : f32
    %30 = vector.broadcast %cst_15 : f32 to vector<2x8xf32>
    %31 = arith.select %25, %29, %30 : vector<2x8xi1>, vector<2x8xf32>
    %32 = arith.addf %26, %31 : vector<2x8xf32>
    %c0_16 = arith.constant 0 : index
    %c0_17 = arith.constant 0 : index
    %33 = vector.load %arg7[%c0_16, %c0_17] : memref<2x8xf32, #tpu.memory_space<vmem>>, vector<2x8xf32>
    tpu.vector_store %arg7[%c0_16, %c0_17], %32 {strides = array<i32>} : memref<2x8xf32, #tpu.memory_space<vmem>>, vector<2x8xf32>,
    %c0_i32_18 = arith.constant 0 : i32
    %34 = arith.cmpi eq, %arg1, %c0_i32_18 : i32
    %c0_i32_19 = arith.constant 0 : i32
    %35 = arith.cmpi eq, %arg2, %c0_i32_19 : i32
    %36 = arith.andi %34, %35 : i1
    %37 = arith.extui %36 : i1 to i32
    %c0_i32_20 = arith.constant 0 : i32
    %38 = arith.cmpi ne, %37, %c0_i32_20 : i32
    scf.if %38 {
      %c0_21 = arith.constant 0 : index
      %c0_22 = arith.constant 0 : index
      %39 = vector.load %arg7[%c0_21, %c0_22] : memref<2x8xf32, #tpu.memory_space<vmem>>, vector<2x8xf32>
      %40 = vector.shape_cast %39 : vector<2x8xf32> to vector<1x2x8xf32>
      %cst_23 = arith.constant dense<0.000000e+00> : vector<1xf32>
      %41 = vector.multi_reduction <add>, %40, %cst_23 [1, 2] : vector<1x2x8xf32> to vector<1xf32>
      %42 = vector.shape_cast %41 : vector<1xf32> to vector<1x1x1xf32>
      %43 = vector.extract %42[0, 0, 0] : f32 from vector<1x1x1xf32>
      %c0_24 = arith.constant 0 : index
      %c0_25 = arith.constant 0 : index
      %44 = memref.load %arg6[%c0_24, %c0_25] : memref<1x1xf32, #tpu.memory_space<smem>>
      memref.store %43, %arg6[%c0_24, %c0_25] : memref<1x1xf32, #tpu.memory_space<smem>>
    } else {
    }
    return
  }
  func.func @transform_0(%arg0: i32, %arg1: i32, %arg2: i32) -> (i32, i32, i32) {
    %c1_i32 = arith.constant 1 : i32
    %0 = arith.muli %arg0, %c1_i32 : i32
    %1 = arith.addi %0, %arg1 : i32
    %c0_i32 = arith.constant 0 : i32
    %2 = arith.minsi %1, %c0_i32 : i32
    %c0_i32_0 = arith.constant 0 : i32
    %c0_i32_1 = arith.constant 0 : i32
    return %c0_i32_0, %2, %arg2 : i32, i32, i32
  }
  func.func @transform_1(%arg0: i32, %arg1: i32, %arg2: i32) -> (i32, i32, i32) {
    %c1_i32 = arith.constant 1 : i32
    %0 = arith.muli %arg0, %c1_i32 : i32
    %1 = arith.addi %0, %arg1 : i32
    %c0_i32 = arith.constant 0 : i32
    %2 = arith.minsi %1, %c0_i32 : i32
    %c0_i32_0 = arith.constant 0 : i32
    %c0_i32_1 = arith.constant 0 : i32
    %c0_i32_2 = arith.constant 0 : i32
    return %c0_i32_0, %2, %c0_i32_1 : i32, i32, i32
  }
  func.func @transform_2(%arg0: i32, %arg1: i32, %arg2: i32) -> (i32, i32, i32) {
    %c1_i32 = arith.constant 1 : i32
    %0 = arith.muli %arg0, %c1_i32 : i32
    %1 = arith.addi %0, %arg1 : i32
    %c0_i32 = arith.constant 0 : i32
    %2 = arith.minsi %1, %c0_i32 : i32
    %c0_i32_0 = arith.constant 0 : i32
    %c0_i32_1 = arith.constant 0 : i32
    %c0_i32_2 = arith.constant 0 : i32
    return %c0_i32_0, %2, %c0_i32_1 : i32, i32, i32
  }
  func.func @transform_3(%arg0: i32, %arg1: i32, %arg2: i32) -> (i32, i32) {
    %c0_i32 = arith.constant 0 : i32
    %c0_i32_0 = arith.constant 0 : i32
    return %arg0, %c0_i32 : i32, i32
  }
}

</mosaic_0001>

<bundles_post_ra>
// kernel: tpu_custom_call.1
= control target key start
LH: loop header
LB: loop body
LE: loop exit
PB: predicated region body
PF: predicated region fallthrough
CT: control target
= control target key end

     0   :  { %s272_s0 = inlined_call_operand.vmem [shape: f32[2,8,32], index: 0, kind: input, shape index: {}]   ;;  %s273_s1 = inlined_call_operand.vmem [shape: s32[2,8,1], index: 1, kind: input, shape index: {}]   ;;  %s274_s2 = inlined_call_operand.vmem [shape: f32[2,8,1], index: 2, kind: input, shape index: {}]   ;;  %s275_s3 = inlined_call_operand.hbm [shape: f32[1,1], index: 3, kind: output, shape index: {}]  }
   0x1   :  { %v106_v0 = vld [vmem:[%s273_s1] sm:$0xff] }
   0x2   :  { %8 = vsyncpa [#allocation4], 0  ;;  %v228_v1 = vmov 0   ;;  %v107_v2 = vld [vmem:[%s273_s1 + $0x8] sm:$0xff]  ;;  %v110_v3 = vlaneseq  ;;  %v104_v5 = vld [vmem:[%s272_s0] sm:$0xff]  ;;  %vm125_vm0 = vcmask 261120  }
   0x3   :  { %212 = vset.pattern.permute.xlu0 %v228_v1  ;;  %213 = vset.pattern.permute.xlu2 %v228_v1  ;;  %v105_v9 = vld [vmem:[%s272_s0 + $0x8] sm:$0xff]  ;;  %v108_v14 = vld [vmem:[%s274_s2] sm:$0xff]  ;;  %vm102_vm3 = vcmask 58368   ;;  %v229_v21 = vmov 0.0   ;;  %vm152_vm4 = vcmask 1041409   ;;  %s179_s23 = sshll.u32 %s275_s3, 4  ;;  %s180_s23 = int_to_ptr.hbm [resolvable:$true] %s179_s23 }
   0x4   :  { %116 = vperm.xlu0 %212, %v106_v0   ;;  %v111_v4 = vand.u32 127, %v110_v3  ;;  %v109_v17 = vld [vmem:[%s274_s2 + $0x8] sm:$0xff]  ;;  %103 = vst.msk [vmem:[#allocation2] sm:$0x3] %vm102_vm3, %v229_v21  ;;  %s230_s25 = smov [#allocation3]  }
   0x6   :  { %vm136_vm5 = vcmp.lt.s32.totalorder %v111_v4, 8 }
   0xb   :  { %v137_v26 = vld [vmem:[#allocation2] sm:$0x3] }
   0xc   :  { %119 = vperm.xlu0 %212, %v107_v2  }
  0x76   :  { %v117_v6 = vpop.permute.xlu0 %116 }
  0x77   :  { %vm121_vm1 = vcmp.eq.s32.totalorder %v111_v4, %v117_v6 }
  0x78   :  { %v123_v7 = vsel %vm121_vm1, %v104_v5, 0.0 }
  0x79   :  { %v126_v8 = vsel %vm125_vm0, %v123_v7, 0.0 }
  0x7a   :  { %127 = vadd.xlane.f32.xlu1 %v126_v8 }
  0x7e   :  { %v120_v10 = vpop.permute.xlu0 %119 }
  0x7f   :  { %vm122_vm2 = vcmp.eq.s32.totalorder %v111_v4, %v120_v10 }
  0x80   :  { %v124_v11 = vsel %vm122_vm2, %v105_v9, 0.0 }
  0x81   :  { %v129_v12 = vsel %vm125_vm0, %v124_v11, 0.0 }
  0x82   :  { %130 = vadd.xlane.f32.xlu1 %v129_v12 }
  0xed   :  { %v128_v13 = vpop.xlane.xlu1 %127 }
  0xee   :  { %v138_v15 = vsub.f32 0.0, %v128_v13 }
  0xf0   :  { %v140_v16 = vmul.f32 %v138_v15, %v108_v14 }
  0xf2   :  { %145 = vperm.xlu2 %213, %v140_v16  }
  0xf5   :  { %v131_v18 = vpop.xlane.xlu1 %130 }
  0xf6   :  { %v139_v19 = vsub.f32 0.0, %v131_v18 }
  0xf8   :  { %v141_v20 = vmul.f32 %v139_v19, %v109_v17 }
  0xfa   :  { %148 = vperm.xlu2 %213, %v141_v20  }
 0x14c   :  { %v146_v22 = vpop.permute.xlu2 %145 }
 0x14d   :  { %v150_v24 = vperm.slane %v146_v22, %v111_v4 }
 0x154   :  { %v149_v23 = vpop.permute.xlu2 %148 }
 0x155   :  { %v151_v25 = vperm.slane %v149_v23, %v111_v4 }
 0x157   :  { %v153_v27 = vsel %vm152_vm4, %v151_v25, %v150_v24 }
 0x158   :  { %v155_v28 = vsel %vm136_vm5, %v153_v27, 0.0 }
 0x159   :  { %v156_v29 = vadd.f32 %v155_v28, %v137_v26 }
 0x15b   :  { %158 = vst.msk [vmem:[#allocation2] sm:$0x3] %vm102_vm3, %v156_v29 }
 0x162   :  { %v161_v30 = vld [vmem:[#allocation2] sm:$0x3] }
 0x163   :  { %v162_v31 = vsel %vm102_vm3, %v161_v30, 0.0 }
 0x164   :  { %163 = vadd.xlane.f32.xlu0 %v162_v31 }
 0x1d7   :  { %v164_v32 = vpop.xlane.xlu0 %163 }
 0x1d8   :  { %v165_v33 = vrot.slane %v164_v32, 4 }
 0x1da   :  { %v166_v34 = vadd.f32 %v165_v33, %v164_v32 }
 0x1dc   :  { %v167_v35 = vrot.slane %v166_v34, 2 }
 0x1de   :  { %v168_v36 = vadd.f32 %v167_v35, %v166_v34 }
 0x1e0   :  { %v169_v37 = vrot.slane %v168_v36, 1 }
 0x1e2   :  { %v170_v38 = vadd.f32 %v169_v37, %v168_v36 }
 0x1e4   :  { %207 = vpush %v170_v38 }
 0x215   :  { %s208_s24 = spop %207 }
 0x216   :  { %173 = sst [smem:[#allocation3]] %s208_s24 }
 0x217   :  { %182 = dma.smem_to_hbm %s230_s25, 16, %s180_s23, [#allocation4]  }
 0x218   :  { %226 = dma.done.wait [#allocation4], 16  }
 0x219   :  { %227 = vsyncadd [#allocation4], 4294967280 }
 0x21a   :  { %187 = sfence }
 0x21b   :  { %188 = vsyncpa [#allocation4], 1 }

</bundles_post_ra>
